<compile_context>
chip_gen: v7x
topology: tpu7x:2x2x1
jax: 0.10.0
libtpu: 0.0.40
codegen_flags: <defaults>
</compile_context>

<pallas_src>
import functools

import jax
import jax.numpy as jnp
from jax.experimental import pallas as pl
from jax.experimental.pallas import tpu as pltpu


def se_block_kernel(x_ref, dwt_ref, db_ref, uwt_ref, ub_ref, o_ref, *, rmplanes):
    # ---- squeeze: global average pool over spatial (lane reduction), f32 acc.
    pooled = jnp.mean(x_ref[...].astype(jnp.float32), axis=-1)          # (Bt, C)

    # ---- excite: batched 1x1 convs == small matmuls.
    h = jnp.dot(pooled, dwt_ref[...],
                preferred_element_type=jnp.float32) + db_ref[...]       # (Bt, Nint)
    h = jnp.maximum(h, 0.0)

    logits = jnp.dot(h, uwt_ref[...],
                     preferred_element_type=jnp.float32) + ub_ref[...]  # (Bt, C)
    s = jax.nn.sigmoid(logits)                                          # (Bt, C)

    # First rmplanes channels pass through with scale exactly 1.0 (VPU select,
    # no sublane concat).  rmplanes is a static Python int.
    chan = jax.lax.broadcasted_iota(jnp.int32, s.shape, dimension=1)
    scale = jnp.where(chan < rmplanes, jnp.float32(1.0), s)             # (Bt, C)

    # ---- scale: re-read x from VMEM (cheap vld) rather than reusing the
    # materialized tile from the pooling step.
    o_ref[...] = (x_ref[...].astype(jnp.float32)
                  * scale[:, :, None]).astype(o_ref.dtype)


def se_block_pallas(x, down_w, down_b, up_w, up_b, rmplanes, *,
                    vmem_limit_bytes=None):
    """x: (B, C, H, W) f32 or bf16, NCHW.  Returns (B, C, H, W) same dtype."""
    B, C, H, W = x.shape
    assert H == W, "SEBlock.forward uses avg_pool2d(k=W); assumes square input"
    HW = H * W
    n_int = down_w.shape[0]
    c_out = up_w.shape[0]
    assert c_out == C - rmplanes

    x_flat = x.reshape(B, C, HW)

    # Host-side weight prep: transpose for (Bt,C)@(C,Nint) form; zero-pad the
    # "up" projection to cover all C channels (padded rows are overridden to
    # scale==1 in-kernel, so their values are irrelevant).
    dwt = jnp.asarray(down_w, jnp.float32).T                      # (C, Nint)
    db = jnp.asarray(down_b, jnp.float32).reshape(1, n_int)       # (1, Nint)
    uw_full = jnp.zeros((C, n_int), jnp.float32).at[rmplanes:].set(
        jnp.asarray(up_w, jnp.float32))
    uwt = uw_full.T                                               # (Nint, C)
    ub_full = jnp.zeros((1, C), jnp.float32).at[0, rmplanes:].set(
        jnp.asarray(up_b, jnp.float32))

    # ---- block sizing: pick batch tile Bt from the VMEM budget so the
    # double-buffered (in + out) blocks fit on every generation (v5e 16 MiB
    # scoped default, v7x 64 MiB physical).
    itemsize = jnp.dtype(x.dtype).itemsize
    try:
        vmem_phys = pltpu.get_tpu_info().vmem_capacity_bytes
    except Exception:  # conservative fallback (v7x per-core VMEM)
        vmem_phys = 64 * 1024 * 1024
    if vmem_limit_bytes is None:
        vmem_limit_bytes = min(vmem_phys // 2, 64 * 1024 * 1024)
    block_budget = vmem_limit_bytes // 6        # 2x in + 2x out buffers + headroom
    per_example = max(C * HW * itemsize, 1)
    bt = max(1, min(B, block_budget // per_example))
    if B >= 2:
        # keep >=2 grid steps so the parallel batch axis shards across cores.
        bt = min(bt, pl.cdiv(B, 2))
    while B % bt:                               # keep the index map exact
        bt -= 1
    # TODO(synk): if a single example (C*HW) exceeds the VMEM block budget,
    # fall back to a two-pass spatially-tiled kernel (pool/excite pass with an
    # "arbitrary" HW reduction axis, then an elementwise scale pass).

    grid = (B // bt,)

    cost = pl.CostEstimate(
        flops=B * C * HW + 4 * B * C * n_int,          # ~memory-bound
        transcendentals=B * C,                         # sigmoid
        bytes_accessed=2 * B * C * HW * itemsize,
    )

    kernel = functools.partial(se_block_kernel, rmplanes=rmplanes)

    out_flat = pl.pallas_call(
        kernel,
        out_shape=jax.ShapeDtypeStruct((B, C, HW), x.dtype),
        grid_spec=pltpu.PrefetchScalarGridSpec(
            num_scalar_prefetch=0,
            grid=grid,
            in_specs=[
                pl.BlockSpec((bt, C, HW), lambda b: (b, 0, 0)),   # x
                pl.BlockSpec((C, n_int), lambda b: (0, 0)),       # down weight^T
                pl.BlockSpec((1, n_int), lambda b: (0, 0)),       # down bias
                pl.BlockSpec((n_int, C), lambda b: (0, 0)),       # up weight^T (padded)
                pl.BlockSpec((1, C), lambda b: (0, 0)),           # up bias (padded)
            ],
            out_specs=pl.BlockSpec((bt, C, HW), lambda b: (b, 0, 0)),
        ),
        compiler_params=pltpu.CompilerParams(
            dimension_semantics=("parallel",),
            vmem_limit_bytes=vmem_limit_bytes),
        input_output_aliases={0: 0},       # allow x's HBM buffer to be reused
        cost_estimate=cost,
    )(x_flat, dwt, db, uwt, ub_full)

    return out_flat.reshape(B, C, H, W)


def se_block_reference(x, down_w, down_b, up_w, up_b, rmplanes):
    """Pure-JAX reference mirroring the PyTorch forward (f32 math)."""
    x = x.astype(jnp.float32)
    pooled = jnp.mean(x, axis=(2, 3))                          # (B, C)
    h = jnp.maximum(pooled @ down_w.T + down_b, 0.0)           # (B, Nint)
    s = jax.nn.sigmoid(h @ up_w.T + up_b)                      # (B, C - rm)
    s = s[:, :, None, None]
    return jnp.concatenate([x[:, :rmplanes], x[:, rmplanes:] * s], axis=1)


if __name__ == "__main__":
    # Module config (small, consistent with SEBlock.__init__):
    input_channels = 8
    internal_neurons = 4
    ratio = 0.25
    rmplanes = int(input_channels * ratio)          # 2
    c_out = input_channels - rmplanes               # 6

    B, H, W = 2, 16, 16

    key = jax.random.PRNGKey(0)
    kx, kdw, kdb, kuw, kub = jax.random.split(key, 5)

    x = jax.random.normal(kx, (B, input_channels, H, W), dtype=jnp.float32)
    # 1x1 conv weights (out, in, 1, 1) flattened to (out, in); deterministic init.
    down_w = 0.1 * jax.random.normal(kdw, (internal_neurons, input_channels),
                                     dtype=jnp.float32)
    down_b = 0.1 * jax.random.normal(kdb, (internal_neurons,), dtype=jnp.float32)
    up_w = 0.1 * jax.random.normal(kuw, (c_out, internal_neurons),
                                   dtype=jnp.float32)
    up_b = 0.1 * jax.random.normal(kub, (c_out,), dtype=jnp.float32)

    # ---- f32 path (strict check vs reference)
    out = se_block_pallas(x, down_w, down_b, up_w, up_b, rmplanes)
    out = jax.block_until_ready(out)
    ref = se_block_reference(x, down_w, down_b, up_w, up_b, rmplanes)
    assert out.shape == (B, input_channels, H, W)
    assert jnp.allclose(out, ref, atol=1e-5, rtol=1e-5), "f32 mismatch vs reference"

    # ---- bf16 I/O path (pool/matmuls/sigmoid still accumulate in f32)
    x_bf16 = x.astype(jnp.bfloat16)
    out_bf16 = jax.block_until_ready(
        se_block_pallas(x_bf16, down_w, down_b, up_w, up_b, rmplanes))
    ref_bf16 = se_block_reference(x_bf16.astype(jnp.float32), down_w, down_b,
                                  up_w, up_b, rmplanes)
    assert out_bf16.dtype == jnp.bfloat16
    assert jnp.allclose(out_bf16.astype(jnp.float32), ref_bf16,
                        atol=2e-2, rtol=2e-2), "bf16 mismatch vs reference"

    print("KERNEL_OK")
</pallas_src>

<mosaic_0001>
module attributes {stable_mosaic.version = 11 : i64} {
  func.func @se_block_kernel(%arg0: i32, %arg1: memref<1x8x256xf32, #tpu.memory_space<vmem>>, %arg2: memref<8x4xf32, #tpu.memory_space<vmem>>, %arg3: memref<1x4xf32, #tpu.memory_space<vmem>>, %arg4: memref<4x8xf32, #tpu.memory_space<vmem>>, %arg5: memref<1x8xf32, #tpu.memory_space<vmem>>, %arg6: memref<1x8x256xf32, #tpu.memory_space<vmem>>) attributes {dimension_semantics = [#tpu.dimension_semantics<parallel>], iteration_bounds = array<i64: 2>, scalar_prefetch = 0 : i64, scratch_operands = 0 : i64, tpu.core_type = #tpu.core_type<tc>, window_params = [{transform_indices = @transform_0, window_bounds = array<i64: 1, 8, 256>}, {pipeline_mode = #tpu.pipeline_mode<synchronous>, transform_indices = @transform_1, window_bounds = array<i64: 8, 4>}, {pipeline_mode = #tpu.pipeline_mode<synchronous>, transform_indices = @transform_2, window_bounds = array<i64: 1, 4>}, {pipeline_mode = #tpu.pipeline_mode<synchronous>, transform_indices = @transform_3, window_bounds = array<i64: 4, 8>}, {pipeline_mode = #tpu.pipeline_mode<synchronous>, transform_indices = @transform_4, window_bounds = array<i64: 1, 8>}, {transform_indices = @transform_5, window_bounds = array<i64: 1, 8, 256>}]} {
    %c0 = arith.constant 0 : index
    %c0_0 = arith.constant 0 : index
    %c0_1 = arith.constant 0 : index
    %0 = vector.load %arg1[%c0, %c0_0, %c0_1] : memref<1x8x256xf32, #tpu.memory_space<vmem>>, vector<1x8x256xf32>
    %cst = arith.constant dense<0.000000e+00> : vector<1x8xf32>
    %1 = vector.multi_reduction <add>, %0, %cst [2] : vector<1x8x256xf32> to vector<1x8xf32>
    %cst_2 = arith.constant 2.560000e+02 : f32
    %2 = vector.broadcast %cst_2 : f32 to vector<1x8xf32>
    %3 = arith.divf %1, %2 : vector<1x8xf32>
    %c0_3 = arith.constant 0 : index
    %c0_4 = arith.constant 0 : index
    %4 = vector.load %arg2[%c0_3, %c0_4] : memref<8x4xf32, #tpu.memory_space<vmem>>, vector<8x4xf32>
    %cst_5 = arith.constant dense<0.000000e+00> : vector<1x4xf32>
    %5 = tpu.matmul %3, %4, %cst_5 {dimension_numbers = #tpu.dot_dimension_numbers<[1], [0], [0], [1], [0, 0, 1, 1], [], []>} : vector<1x8xf32>, vector<8x4xf32>, vector<1x4xf32> -> vector<1x4xf32>
    %c0_6 = arith.constant 0 : index
    %c0_7 = arith.constant 0 : index
    %6 = vector.load %arg3[%c0_6, %c0_7] : memref<1x4xf32, #tpu.memory_space<vmem>>, vector<1x4xf32>
    %7 = arith.addf %5, %6 : vector<1x4xf32>
    %cst_8 = arith.constant 0.000000e+00 : f32
    %8 = vector.broadcast %cst_8 : f32 to vector<1x4xf32>
    %9 = arith.maximumf %7, %8 : vector<1x4xf32>
    %c0_9 = arith.constant 0 : index
    %c0_10 = arith.constant 0 : index
    %10 = vector.load %arg4[%c0_9, %c0_10] : memref<4x8xf32, #tpu.memory_space<vmem>>, vector<4x8xf32>
    %cst_11 = arith.constant dense<0.000000e+00> : vector<1x8xf32>
    %11 = tpu.matmul %9, %10, %cst_11 {dimension_numbers = #tpu.dot_dimension_numbers<[1], [0], [0], [1], [0, 0, 1, 1], [], []>} : vector<1x4xf32>, vector<4x8xf32>, vector<1x8xf32> -> vector<1x8xf32>
    %c0_12 = arith.constant 0 : index
    %c0_13 = arith.constant 0 : index
    %12 = vector.load %arg5[%c0_12, %c0_13] : memref<1x8xf32, #tpu.memory_space<vmem>>, vector<1x8xf32>
    %13 = arith.addf %11, %12 : vector<1x8xf32>
    %14 = arith.negf %13 : vector<1x8xf32>
    %15 = math.exp %14 : vector<1x8xf32>
    %cst_14 = arith.constant 1.000000e+00 : f32
    %16 = vector.broadcast %cst_14 : f32 to vector<1x8xf32>
    %17 = arith.addf %16, %15 : vector<1x8xf32>
    %18 = arith.divf %16, %17 : vector<1x8xf32>
    %19 = tpu.iota {dimensions = array<i32: 1>} : vector<1x8xi32>
    %c2_i32 = arith.constant 2 : i32
    %20 = vector.broadcast %c2_i32 : i32 to vector<1x8xi32>
    %21 = arith.cmpi slt, %19, %20 : vector<1x8xi32>
    %cst_15 = arith.constant 1.000000e+00 : f32
    %22 = vector.broadcast %cst_15 : f32 to vector<1x8xf32>
    %23 = arith.select %21, %22, %18 : vector<1x8xi1>, vector<1x8xf32>
    %c0_16 = arith.constant 0 : index
    %c0_17 = arith.constant 0 : index
    %c0_18 = arith.constant 0 : index
    %24 = vector.load %arg1[%c0_16, %c0_17, %c0_18] : memref<1x8x256xf32, #tpu.memory_space<vmem>>, vector<1x8x256xf32>
    %25 = vector.shape_cast %23 : vector<1x8xf32> to vector<1x8x1xf32>
    %26 = vector.broadcast %25 : vector<1x8x1xf32> to vector<1x8x256xf32>
    %27 = arith.mulf %24, %26 : vector<1x8x256xf32>
    %c0_19 = arith.constant 0 : index
    %c0_20 = arith.constant 0 : index
    %c0_21 = arith.constant 0 : index
    %28 = vector.load %arg6[%c0_19, %c0_20, %c0_21] : memref<1x8x256xf32, #tpu.memory_space<vmem>>, vector<1x8x256xf32>
    tpu.vector_store %arg6[%c0_19, %c0_20, %c0_21], %27 {strides = array<i32>} : memref<1x8x256xf32, #tpu.memory_space<vmem>>, vector<1x8x256xf32>,
    return
  }
  func.func @transform_0(%arg0: i32) -> (i32, i32, i32) {
    %c0_i32 = arith.constant 0 : i32
    %c0_i32_0 = arith.constant 0 : i32
    %c0_i32_1 = arith.constant 0 : i32
    return %arg0, %c0_i32, %c0_i32_0 : i32, i32, i32
  }
  func.func @transform_1(%arg0: i32) -> (i32, i32) {
    %c0_i32 = arith.constant 0 : i32
    %c0_i32_0 = arith.constant 0 : i32
    %c0_i32_1 = arith.constant 0 : i32
    return %c0_i32, %c0_i32_0 : i32, i32
  }
  func.func @transform_2(%arg0: i32) -> (i32, i32) {
    %c0_i32 = arith.constant 0 : i32
    %c0_i32_0 = arith.constant 0 : i32
    %c0_i32_1 = arith.constant 0 : i32
    return %c0_i32, %c0_i32_0 : i32, i32
  }
  func.func @transform_3(%arg0: i32) -> (i32, i32) {
    %c0_i32 = arith.constant 0 : i32
    %c0_i32_0 = arith.constant 0 : i32
    %c0_i32_1 = arith.constant 0 : i32
    return %c0_i32, %c0_i32_0 : i32, i32
  }
  func.func @transform_4(%arg0: i32) -> (i32, i32) {
    %c0_i32 = arith.constant 0 : i32
    %c0_i32_0 = arith.constant 0 : i32
    %c0_i32_1 = arith.constant 0 : i32
    return %c0_i32, %c0_i32_0 : i32, i32
  }
  func.func @transform_5(%arg0: i32) -> (i32, i32, i32) {
    %c0_i32 = arith.constant 0 : i32
    %c0_i32_0 = arith.constant 0 : i32
    %c0_i32_1 = arith.constant 0 : i32
    return %arg0, %c0_i32, %c0_i32_0 : i32, i32, i32
  }
}

</mosaic_0001>

<bundles_post_ra>
// kernel: tpu_custom_call.1
= control target key start
LH: loop header
LB: loop body
LE: loop exit
PB: predicated region body
PF: predicated region fallthrough
CT: control target
= control target key end

     0   :  { %10 = vsyncpa [#allocation3], 0  ;;  %s910_s0 = inlined_call_operand.hbm [shape: f32[2,8,256], index: 0, kind: input, shape index: {}, may-alias: {0,5}]   ;;  %s911_s1 = inlined_call_operand.vmem [shape: f32[8,4], index: 1, kind: input, shape index: {}]   ;;  %s912_s2 = inlined_call_operand.vmem [shape: f32[1,4], index: 2, kind: input, shape index: {}]   ;;  %s913_s3 = inlined_call_operand.vmem [shape: f32[4,8], index: 3, kind: input, shape index: {}]   ;;  %s914_s4 = inlined_call_operand.vmem [shape: f32[1,8], index: 4, kind: input, shape index: {}]   ;;  %s915_s5 = inlined_call_operand.hbm [shape: f32[2,8,256], index: 5, kind: output, shape index: {}, may-alias: {0,5}]  }
   0x1   :  { %12 = vsyncpa [#allocation3 + $0x1], 0 }
   0x2   :  { %13 = vsyncpa [#allocation4], 0 }
   0x3   :  { %15 = vsyncpa [#allocation4 + $0x1], 0  ;;  %s733_s18 = smov 0   ;;  %s735_s19 = smov 0  }
   0x4   :  { %s737_s20 = smov 0   ;;  %s739_s21 = smov 0  }
   0x5 LB: > { %s754_s22 = sadd.s32 4294967295, %s697_s21   ;;  %s515_s23 = sadd.s32 4294967294, %s697_s21   ;;  %s697_s21 = sphi %s739_s21, %s930_s21   ;;  %s693_s20 = sphi %s737_s20, %s929_s20   ;;  %s689_s19 = sphi %s735_s19, %s928_s19   ;;  %s685_s18 = sphi %s733_s18, %s927_s18  }
   0x6   : > { %s758_s24 = sadd.s32 1, %s697_s21   ;;  %s28_s25 = sadd.s32 1, %s693_s20 }
   0x7   : > { %s25_s26 = ssub.s32 %s697_s21, %s758_s24  ;;  %p35_p0 = scmp.ne.s32.totalorder %s693_s20, %s689_s19 }
   0x8   : > { %p26_p1 = scmp.eq.s32.totalorder %s25_s26, 0  ;;  %p36_p2 = scmp.eq.s32.totalorder %s697_s21, 0 }
   0x9   : > { %p41_p3 = scmp.ne.s32.totalorder %s689_s19, %s685_s18  ;;  %p42_p4 = scmp.eq.s32.totalorder %s754_s22, 0 }
   0xa   : > { %s770_s27 = scalar_select %p26_p1, %s693_s20, %s28_s25  }
   0xb   : > { %p772_p5 = por %p36_p2, %p35_p0  ;;  %p776_p6 = por %p42_p4, %p41_p3 }
   0xc   : > { %p149_p7 = scmp.eq.s32.totalorder %s754_s22, 1  ;;  %p155_p8 = scmp.eq.s32.totalorder %s515_s23, 1 }
   0xd   : > { %p561_p10 = scmp.lt.s32.totalorder %s697_s21, 2  ;;  %s187_s7 = sand.u32 1, %s693_s20  }
   0xe   : > { %p783_p11 = por %p149_p7, %p35_p0  ;;  %p787_p12 = por %p155_p8, %p41_p3 }
   0xf   : > { %s533_s8 = sshll.u32 %s697_s21, 8  ;;  %s518_s9 = sshll.u32 %s187_s7, 4 }
  0x10   : > { %s919_s30 = scalar_select %p783_p11, 1, 0 }
  0x11   : > { %s920_s6 = scalar_select %p787_p12, 1, 0 }
  0x12   : > { %s796_s12 = scalar_lea.hbm %s910_s0, %s533_s8  ;;  %s191_s13 = scalar_lea.vmem [#allocation2], %s518_s9 }
  0x13   : > { %s199_s14 = sshll.u32 %s191_s13, 4  ;;  %p800_p13 = pnand %p561_p10, %p772_p5  ;;  %s804_s14 = int_to_ptr.vmem [resolvable:$true] %s199_s14 }
  0x14   : > { %s188_s16 = scalar_lea.sflag [#allocation3], %s187_s7  ;;  %s601_s17 = scalar_lea.hbm %s796_s12, 256 }
  0x15   : > { %p602_p2 = scmp.ne.s32.totalorder %s796_s12, %s601_s17  ;;  %p603_p3 = pneg %p800_p13 }
  0x16   : > { %s606_s26 = scalar_lea.hbm %s910_s0, 512  ;;  %p607_p5 = scmp.lt.u32.totalorder %s796_s12, %s910_s0 }
  0x17   : > { %p604_p4 = pnand %p603_p3, %p602_p2  ;;  %p608_p8 = scmp.lt.u32.totalorder %s606_s26, %s601_s17 }
  0x18   : > { %p610_p9 = scmp.lt.u32.totalorder %s601_s17, %s796_s12 }
  0x19   : > { %p605_p7 = pneg %p604_p4  ;;  %p609_p10 = por %p608_p8, %p607_p5 }
  0x1b   : > { %p611_p0 = por %p610_p9, %p609_p10 }
  0x1d   : > { %p612_p1 = pnand %p611_p0, %p605_p7 }
  0x1f   : > { %615 = shalt.err (!%p612_p1)
}
  0x20   : > { %s616_s7 = scalar_lea.vmem %s804_s14, 256  ;;  %s699_s9 = smov [#allocation2]  }
  0x21   : > { %p617_p2 = scmp.ne.s32.totalorder %s804_s14, %s616_s7  ;;  %s621_s10 = sshll.u32 %s699_s9, 4  ;;  %s622_s10 = int_to_ptr.vmem [resolvable:$false] %s621_s10 }
  0x22   : > { %s623_s11 = scalar_lea.vmem %s622_s10, 512  ;;  %p624_p11 = scmp.lt.s32.totalorder %s804_s14, %s622_s10 }
  0x23   : > { %p619_p4 = pnand %p617_p2, %p603_p3  ;;  %p625_p5 = scmp.lt.s32.totalorder %s623_s11, %s616_s7 }
  0x25   : > { %p620_p12 = pneg %p619_p4  ;;  %p626_p8 = por %p625_p5, %p624_p11 }
  0x27   : > { %p627_p9 = pnand %p626_p8, %p620_p12 }
  0x29   : > { %630 = shalt.err (!%p627_p9)
}
  0x2a   : > { %556 = dma.hbm_to_vmem [thread:$0]  (!%p800_p13), %s796_s12, 256, %s804_s14, %s188_s16  }
  0x2b   : > { %p922_p0 = scmp.lt.s32.totalorder %s697_s21, 3  ;;  %p923_p1 = scmp.ge.s32.totalorder %s697_s21, 1 }
  0x2d   : > { %p205_p3 = pnand %p923_p1, %p922_p0 }
  0x2e   : > { %s838_s13 = sand.u32 (!%p205_p3), 1, %s689_s19  }
  0x2f   : > { %208 = sbr.rel (%p205_p3) target bundleno = 794 (0x31a), region = 40  ;;  %s522_s17 = sshll.u32 (!%p205_p3), %s838_s13, 4 }
  0x30   : > { %s211_s23 = scalar_lea.sflag (!%p205_p3), [#allocation3], %s838_s13  ;;  %s214_s15 = scalar_lea.vmem (!%p205_p3), [#allocation2], %s522_s17 }
  0x36   : > { %676 = dma.done.wait (%p776_p6), %s211_s23, 256  }
  0x37   : > { %678 = vsyncadd (%p776_p6), %s211_s23, 4294967040  ;;  %v241_v0 = vld [vmem:[%s214_s15] sm:$0xff]  ;;  %v242_v1 = vld [vmem:[%s214_s15 + $0x8] sm:$0xff]  ;;  %v700_v3 = vmov 0.0   ;;  %vm701_vm0 = vmmov 0   ;;  %v251_v5 = vlaneseq  ;;  %vm257_vm1 = vcmask 64512  }
  0x38   : > { %v243_v2 = vadd.f32 %v242_v1, %v241_v0  ;;  %539 = vmatprep.subr.mxu0 %v700_v3  ;;  %v248_v4 = vld [vmem:[%s911_s1] sm:$0xff]  ;;  %544 = vmatprep.subr.mxu1 %v700_v3  ;;  %vm337_vm2 = vcmask 1043456   ;;  %vm333_vm3 = vcmask 31744   ;;  %s534_s7 = sshll.u32 %s754_s22, 8  ;;  %s240_s9 = scalar_lea.vmem [#allocation5], %s522_s17 }
  0x39   : > { %540 = vmatpush3.msra.mxu0 %v248_v4  ;;  %541 = vmatprep.mubr.msk.f32.mxu0 %vm701_vm0, %v700_v3  ;;  %v252_v6 = vand.u32 127, %v251_v5  ;;  %v254_v7 = vshrl.u32 %v251_v5, 7  ;;  %v331_v12 = vld [vmem:[%s913_s3] sm:$0xf]  ;;  %s445_s10 = sshll.u32 %s240_s9, 4  ;;  %s866_s15 = scalar_lea.hbm %s915_s5, %s534_s7  ;;  %s868_s10 = int_to_ptr.vmem [resolvable:$true] %s445_s10 }
  0x3a   : > { %244 = vadd.xlane.f32.xlu0 %v243_v2  ;;  %546 = vmatprep.mubr.msk.f32.mxu1 %vm701_vm0, %v700_v3  ;;  %v249_v13 = vld [vmem:[%s912_s2] sm:$0x1]  ;;  %s431_s12 = scalar_lea.sflag [#allocation4], %s838_s13  ;;  %s631_s22 = scalar_lea.vmem %s868_s10, 256 }
  0x3b   : > { %v255_v8 = vsub.s32 %v252_v6, %v254_v7  ;;  %545 = vmatpush3.msk.msra.mxu1 %vm337_vm2, %v331_v12  ;;  %v332_v18 = vld [vmem:[%s914_s4] sm:$0x1]  ;;  %vm417_vm4 = vcmp.lt.s32.totalorder %v252_v6, 2  ;;  %v421_v25 = vsub.s32 0, %v254_v7  ;;  %p632_p6 = scmp.ne.s32.totalorder %s868_s10, %s631_s22  ;;  %p924_p11 = scmp.ne.s32.totalorder %s919_s30, 0 }
  0x3c   : > { %s702_s17 = smov [#allocation5]  }
  0x3d   : > { %p633_p12 = pnand %p632_p6, %p924_p11  ;;  %s635_s14 = sshll.u32 %s702_s17, 4  ;;  %s636_s14 = int_to_ptr.vmem [resolvable:$false] %s635_s14 }
  0x3e   : > { %s637_s29 = scalar_lea.vmem %s636_s14, 512  ;;  %p638_p7 = scmp.lt.s32.totalorder %s868_s10, %s636_s14 }
  0x3f   : > { %p634_p13 = pneg %p633_p12  ;;  %p639_p10 = scmp.lt.s32.totalorder %s637_s29, %s631_s22 }
  0x41   : > { %p640_p2 = por %p639_p10, %p638_p7 }
  0x43   : > { %p641_p4 = pnand %p640_p2, %p634_p13 }
  0xc7   : > { %v245_v9 = vpop.xlane.xlu0 %244 }
  0xc8   : > { %v247_v10 = vmul.f32 0.00390625, %v245_v9 }
  0xca   : > { %v256_v11 = vrot.slane %v247_v10, %v255_v8 }
  0xcc   : > { %542 = vmatmul.mubr.msk.f32.vlgmr.msra.gmra.mrb[0].mxu0 %vm257_vm1, %v256_v11 }
 0x19f   : > { %v326_v14 = vpop.f32.mrb[0].mxu0 }
 0x1a0   : > { %v327_v15 = vadd.f32 %v326_v14, %v249_v13  ;;  %v543_v16 = vpop.f32.mrb[1].mxu0 }
 0x1a2   : > { %v330_v17 = vmax.f32 %v327_v15, 0.0 }
 0x1a4   : > { %547 = vmatmul.mubr.msk.f32.vlgmr.msra.gmra.mrb[0].mxu1 %vm333_vm3, %v330_v17 }
 0x277   : > { %v407_v19 = vpop.f32.mrb[0].mxu1 }
 0x278   : > { %v408_v20 = vadd.f32 %v407_v19, %v332_v18  ;;  %v548_v21 = vpop.f32.mrb[1].mxu1 }
 0x27a   : > { %v527_v22 = vmul.f32 -1.442695, %v408_v20 }
 0x27c   : > { %597 = vpow2.f32 %v527_v22 }
 0x286   : > { %v598_v23 = vpop.eup %597 }
 0x287   : > { %v414_v24 = vadd.f32 1.0, %v598_v23 }
 0x289   : > { %599 = vrcp.f32 %v414_v24 }
 0x293   : > { %v600_v26 = vpop.eup %599 }
 0x294   : > { %v418_v27 = vsel %vm417_vm4, 1.0, %v600_v26 }
 0x295   : > { %v422_v28 = vrot.slane %v418_v27, %v421_v25 }
 0x297   : > { %424 = vbcast.lane.b32.xlu0 %v422_v28, 256 }
 0x309   : > { %v425_v29 = vpop.permute.xlu0 %424 }
 0x30a   : > { %v426_v30 = vmul.f32 %v425_v29, %v241_v0  ;;  %v427_v31 = vmul.f32 %v425_v29, %v242_v1 }
 0x30c   : > { %428 = vst [vmem:[%s240_s9] sm:$0xff] %v426_v30  ;;  %429 = vst [vmem:[%s240_s9 + $0x8] sm:$0xff] %v427_v31 }
 0x30d   : > { %644 = shalt.err (!%p641_p4)
}
 0x30e   : > { %s645_s13 = scalar_lea.hbm %s866_s15, 256  ;;  %s649_s26 = scalar_lea.hbm %s915_s5, 512 }
 0x30f   : > { %p646_p5 = scmp.ne.s32.totalorder %s866_s15, %s645_s13  ;;  %p650_p0 = scmp.lt.u32.totalorder %s866_s15, %s915_s5 }
 0x310   : > { %p651_p1 = scmp.lt.u32.totalorder %s649_s26, %s645_s13  ;;  %p653_p6 = scmp.lt.u32.totalorder %s645_s13, %s866_s15 }
 0x311   : > { %p647_p8 = pnand %p646_p5, %p924_p11 }
 0x312   : > { %p652_p3 = por %p651_p1, %p650_p0 }
 0x313   : > { %p648_p9 = pneg %p647_p8 }
 0x314   : > { %p654_p12 = por %p653_p6, %p652_p3 }
 0x316   : > { %p655_p13 = pnand %p654_p12, %p648_p9 }
 0x318   : > { %658 = shalt.err (!%p655_p13)
}
 0x319   : > { %551 = dma.vmem_to_hbm [thread:$0]  (%p924_p11), %s868_s10, 256, %s866_s15, %s431_s12  }
 0x31a PF: > { %s457_s7 = sand.u32 1, %s685_s18   ;;  %p925_p7 = scmp.ne.s32.totalorder %s920_s6, 0 }
 0x31b   : > { %p926_p10 = scmp.ge.s32.totalorder %s697_s21, 2  ;;  %s458_s9 = scalar_lea.sflag [#allocation4], %s457_s7 }
 0x31d   : > { %p558_p2 = pnand %p926_p10, %p925_p7 }
 0x31f   : > { %680 = dma.done.wait (!%p558_p2), %s458_s9, 256  }
 0x320   : > { %682 = vsyncadd (!%p558_p2), %s458_s9, 4294967040  ;;  %p18_p4 = scmp.ge.s32.totalorder %s758_s24, 4   ;;  %s927_s18 = smov %s689_s19 }
 0x321   : > { %s928_s19 = smov %s693_s20  ;;  %s929_s20 = smov %s770_s27 }
 0x322   : > { %s930_s21 = smov %s758_s24  ;;  %20 = sbr.rel (!%p18_p4) target bundleno = 5 (0x5), region = 85 }
 0x329   :  { %463 = vsyncpa [#allocation3], 1 }
 0x32a   :  { %465 = vsyncpa [#allocation3 + $0x1], 1 }
 0x32b   :  { %466 = vsyncpa [#allocation4], 1 }
 0x32c   :  { %468 = vsyncpa [#allocation4 + $0x1], 1 }

</bundles_post_ra>
